<compile_context>
chip_gen: v7x
topology: tpu7x:2x2x1
jax: 0.10.0
libtpu: 0.0.40
codegen_flags: <defaults>
</compile_context>

<pallas_src>
import functools

import jax
import jax.numpy as jnp
from jax.experimental import pallas as pl
from jax.experimental.pallas import tpu as pltpu


# ----------------------------- small helpers -------------------------------

def _round_up(x, m):
    return (x + m - 1) // m * m


def _softmax_last_f32(x):
    """Numerically-stable softmax over the lane (last) axis, all in f32."""
    m = jnp.max(x, axis=-1, keepdims=True)
    e = jnp.exp(x - m)
    return e * pl.reciprocal(jnp.sum(e, axis=-1, keepdims=True), approx=True)


# ------------------------------ fused kernel --------------------------------
# grid = (B // Bb,).  Per grid step: F MLP on all Bb*(L1+L2) rows (one GEMM per
# layer), one batched score matmul + XLU transpose, both soft alignments, G MLP
# on the stacked rows, length-sums, H MLP (split first-layer weight), final
# linear and log-softmax.  Weights arrive packed: w_ref=(8,Hp,Hp), b_ref=(6,Hp).

def atten_fused_kernel(s_ref, w_ref, b_ref, wfin_ref, bfin_ref, out_ref,
                       *, len1, len2):
    f32 = jnp.float32
    bf16 = jnp.bfloat16

    Bb, Lt, Hp = s_ref.shape
    R = Bb * Lt

    # ---- weights / biases: read once per grid step (bf16 weights, f32 biases)
    wf1, wf2 = w_ref[0], w_ref[1]
    wg1s, wg1a, wg2 = w_ref[2], w_ref[3], w_ref[4]
    wh1s, wh1a, wh2 = w_ref[5], w_ref[6], w_ref[7]
    bf1, bf2 = b_ref[0:1], b_ref[1:2]
    bg1, bg2 = b_ref[2:3], b_ref[3:4]
    bh1, bh2 = b_ref[4:5], b_ref[5:6]

    def dense_relu(x_bf16, w_bf16, bias_f32):
        z = jnp.dot(x_bf16, w_bf16, preferred_element_type=f32) + bias_f32
        return jnp.maximum(z, 0.0)                       # f32

    # ---- 'attend': both sentences already stacked along L -> one GEMM/layer
    s_all = s_ref[...]                                   # (Bb, Lt, Hp) bf16
    s_rows = s_all.reshape(R, Hp)                        # (Bb*Lt, Hp)
    s1 = s_all[:, :len1, :]                              # (Bb, L1, Hp) bf16
    s2 = s_all[:, len1:, :]                              # (Bb, L2, Hp) bf16

    h_f = dense_relu(s_rows, wf1, bf1).astype(bf16)
    f_all = dense_relu(h_f, wf2, bf2).astype(bf16).reshape(Bb, Lt, Hp)
    f1 = f_all[:, :len1, :]                              # (Bb, L1, Hp)
    f2 = f_all[:, len1:, :]                              # (Bb, L2, Hp)

    # One batched score matmul; the reverse direction is an XLU transpose of the
    # small (L1, L2) tiles instead of a second MXU matmul.
    score12 = jnp.einsum('bik,bjk->bij', f1, f2,
                         preferred_element_type=f32)     # (Bb, L1, L2) f32
    score21 = jnp.swapaxes(score12, 1, 2)                # (Bb, L2, L1) f32

    prob1 = _softmax_last_f32(score12).astype(bf16)      # softmax over L2
    prob2 = _softmax_last_f32(score21).astype(bf16)      # softmax over L1

    a1 = jnp.einsum('bij,bjk->bik', prob1, s2,
                    preferred_element_type=f32)          # (Bb, L1, Hp) f32
    a2 = jnp.einsum('bij,bjk->bik', prob2, s1,
                    preferred_element_type=f32)          # (Bb, L2, Hp) f32
    a_rows = jnp.concatenate([a1, a2], axis=1).astype(bf16).reshape(R, Hp)

    # ---- 'compare': G MLP, split first-layer weight (== concat([x, a]) @ Wg1),
    # both sentences again in one stacked GEMM per layer.
    h_g = jnp.maximum(
        jnp.dot(s_rows, wg1s, preferred_element_type=f32)
        + jnp.dot(a_rows, wg1a, preferred_element_type=f32) + bg1, 0.0)
    g_all = jnp.maximum(
        jnp.dot(h_g.astype(bf16), wg2, preferred_element_type=f32) + bg2,
        0.0).reshape(Bb, Lt, Hp)                         # f32

    # ---- 'sum' over sentence length (f32)
    o1 = jnp.sum(g_all[:, :len1, :], axis=1)             # (Bb, Hp)
    o2 = jnp.sum(g_all[:, len1:, :], axis=1)             # (Bb, Hp)

    # ---- classify: H MLP (split first-layer weight), final linear, log-softmax
    h1 = jnp.maximum(
        jnp.dot(o1.astype(bf16), wh1s, preferred_element_type=f32)
        + jnp.dot(o2.astype(bf16), wh1a, preferred_element_type=f32) + bh1, 0.0)
    h2 = jnp.maximum(
        jnp.dot(h1.astype(bf16), wh2, preferred_element_type=f32) + bh2, 0.0)
    logits = (jnp.dot(h2.astype(bf16), wfin_ref[...],
                      preferred_element_type=f32)
              + bfin_ref[...])                           # (Bb, label) f32

    m = jnp.max(logits, axis=-1, keepdims=True)
    z = logits - m
    lse = jnp.log(jnp.sum(jnp.exp(z), axis=-1, keepdims=True))
    out_ref[...] = (z - lse).astype(out_ref.dtype)       # log-softmax, exact f32


# ------------------------- block sizing / VMEM budget ------------------------

def _vmem_bytes_estimate(Bb, L1, L2, Hp, label):
    rows = Bb * (L1 + L2)
    sent = 2 * rows * Hp * 2                              # double-buffered bf16 block
    weights = 2 * (8 * Hp * Hp * 2 + 6 * Hp * 4 + Hp * label * 2 + label * 4)
    inter = 6 * rows * Hp * 4 + 2 * Bb * L1 * L2 * 4      # rough live f32 intermediates
    out = 2 * Bb * label * 4
    return sent + weights + inter + out


def _pick_batch_block(B, L1, L2, Hp, label, *, min_rows=256,
                      vmem_budget=20 * 2 ** 20):
    """Batch block: a multiple of 8 dividing B, >= 2 grid steps (even step count
    preferred so both v7x TensorCores get equal work), >= min_rows stacked GEMM
    rows when possible, under a VMEM budget.  Tiny/awkward batches (<=8 or not a
    multiple of 8) run as one grid step over the whole batch."""
    if B <= 8 or B % 8 != 0:
        return B
    cands = [bb for bb in range(8, B // 2 + 1, 8)
             if B % bb == 0
             and _vmem_bytes_estimate(bb, L1, L2, Hp, label) <= vmem_budget]
    if not cands:
        return 8
    full = [bb for bb in cands if bb * (L1 + L2) >= min_rows]
    pool = full if full else [cands[-1]]
    even = [bb for bb in pool if (B // bb) % 2 == 0]
    return (even or pool)[0]


# ------------------------------- wrapper ------------------------------------

def atten_forward(sent1, sent2, params):
    """sent1/sent2: (B, L, H) float arrays; params from init_params."""
    B, L1, H = sent1.shape
    B2, L2, H2 = sent2.shape
    assert B == B2 and H == H2
    label = params["b_final"].shape[-1]

    Hp = _round_up(H, 128)
    ph = Hp - H

    # Zero-pad the feature dim (exact), concat the two sentences along L so the
    # kernel sees one contiguous row-stack, and cast to bf16 for the MXU path.
    s1p = jnp.pad(sent1.astype(jnp.float32), ((0, 0), (0, 0), (0, ph)))
    s2p = jnp.pad(sent2.astype(jnp.float32), ((0, 0), (0, 0), (0, ph)))
    s_all = jnp.concatenate([s1p, s2p], axis=1).astype(jnp.bfloat16)  # (B, L1+L2, Hp)
    Lt = L1 + L2

    def pad_w(w):                      # (H, H) -> (Hp, Hp)
        return jnp.pad(w, ((0, ph), (0, ph)))

    def pad_b(b):                      # (1, H) -> (Hp,)
        return jnp.pad(b.reshape(-1), (0, ph))

    # Split the 2H-input first-layer weights (concat([x, y]) @ W == x@W_top +
    # y@W_bot) and pack the eight HxH weights / six biases into single operands.
    wg1_s, wg1_a = params["wg1"][:H], params["wg1"][H:]
    wh1_s, wh1_a = params["wh1"][:H], params["wh1"][H:]

    w_stack = jnp.stack(
        [pad_w(params["wf1"]), pad_w(params["wf2"]),
         pad_w(wg1_s), pad_w(wg1_a), pad_w(params["wg2"]),
         pad_w(wh1_s), pad_w(wh1_a), pad_w(params["wh2"])],
        axis=0).astype(jnp.bfloat16)                        # (8, Hp, Hp) bf16
    b_stack = jnp.stack(
        [pad_b(params["bf1"]), pad_b(params["bf2"]),
         pad_b(params["bg1"]), pad_b(params["bg2"]),
         pad_b(params["bh1"]), pad_b(params["bh2"])],
        axis=0).astype(jnp.float32)                         # (6, Hp) f32
    w_fin = jnp.pad(params["w_final"], ((0, ph), (0, 0))).astype(jnp.bfloat16)
    b_fin = params["b_final"].astype(jnp.float32)           # (1, label) f32

    Bb = _pick_batch_block(B, L1, L2, Hp, label)
    assert B % Bb == 0
    grid = (B // Bb,)

    vmem_limit = int(min(48 * 2 ** 20,
                         max(32 * 2 ** 20,
                             2 * _vmem_bytes_estimate(Bb, L1, L2, Hp, label))))

    kernel = functools.partial(atten_fused_kernel, len1=L1, len2=L2)

    log_prob = pl.pallas_call(
        kernel,
        out_shape=jax.ShapeDtypeStruct((B, label), jnp.float32),
        grid_spec=pltpu.PrefetchScalarGridSpec(
            num_scalar_prefetch=0,
            grid=grid,
            in_specs=[
                pl.BlockSpec((Bb, Lt, Hp), lambda b: (b, 0, 0)),   # stacked sentences
                pl.BlockSpec((8, Hp, Hp), lambda b: (0, 0, 0)),    # packed HxH weights
                pl.BlockSpec((6, Hp), lambda b: (0, 0)),           # packed biases
                pl.BlockSpec((Hp, label), lambda b: (0, 0)),       # final linear W
                pl.BlockSpec((1, label), lambda b: (0, 0)),        # final linear b
            ],
            out_specs=pl.BlockSpec((Bb, label), lambda b: (b, 0)),
        ),
        compiler_params=pltpu.CompilerParams(
            dimension_semantics=("parallel",),
            vmem_limit_bytes=vmem_limit),
    )(s_all, w_stack, b_stack, w_fin, b_fin)

    return log_prob


# ----------------------- deterministic parameter init -----------------------

def init_params(key, hidden, label, para_init=0.01):
    def lin(k, din, dout):
        kw, kb = jax.random.split(k)
        w = para_init * jax.random.normal(kw, (din, dout), jnp.float32)
        b = para_init * jax.random.normal(kb, (1, dout), jnp.float32)
        return w, b

    ks = jax.random.split(key, 7)
    p = {}
    p["wf1"], p["bf1"] = lin(ks[0], hidden, hidden)          # mlp_f layer 1
    p["wf2"], p["bf2"] = lin(ks[1], hidden, hidden)          # mlp_f layer 2
    p["wg1"], p["bg1"] = lin(ks[2], 2 * hidden, hidden)      # mlp_g layer 1
    p["wg2"], p["bg2"] = lin(ks[3], hidden, hidden)          # mlp_g layer 2
    p["wh1"], p["bh1"] = lin(ks[4], 2 * hidden, hidden)      # mlp_h layer 1
    p["wh2"], p["bh2"] = lin(ks[5], hidden, hidden)          # mlp_h layer 2
    p["w_final"], p["b_final"] = lin(ks[6], hidden, label)   # final_linear
    return p


# --------------------------- pure-JAX reference ------------------------------

def atten_reference(sent1, sent2, p):
    def mlp(x, w1, b1, w2, b2):
        h = jnp.maximum(x @ w1 + b1, 0.0)
        return jnp.maximum(h @ w2 + b2, 0.0)

    f1 = mlp(sent1, p["wf1"], p["bf1"], p["wf2"], p["bf2"])
    f2 = mlp(sent2, p["wf1"], p["bf1"], p["wf2"], p["bf2"])
    score1 = jnp.einsum("bik,bjk->bij", f1, f2)
    prob1 = jax.nn.softmax(score1, axis=-1)
    prob2 = jax.nn.softmax(jnp.swapaxes(score1, 1, 2), axis=-1)
    c1 = jnp.concatenate([sent1, jnp.einsum("bij,bjk->bik", prob1, sent2)], 2)
    c2 = jnp.concatenate([sent2, jnp.einsum("bij,bjk->bik", prob2, sent1)], 2)
    g1 = mlp(c1, p["wg1"], p["bg1"], p["wg2"], p["bg2"]).sum(1)
    g2 = mlp(c2, p["wg1"], p["bg1"], p["wg2"], p["bg2"]).sum(1)
    h = mlp(jnp.concatenate([g1, g2], 1), p["wh1"], p["bh1"], p["wh2"], p["bh2"])
    logits = h @ p["w_final"] + p["b_final"]
    return jax.nn.log_softmax(logits, axis=-1)


if __name__ == "__main__":
    B, L1, L2, H, LABEL = 2, 8, 8, 32, 3

    key = jax.random.PRNGKey(0)
    k_s1, k_s2, k_p = jax.random.split(key, 3)
    sent1 = jax.random.normal(k_s1, (B, L1, H), jnp.float32)
    sent2 = jax.random.normal(k_s2, (B, L2, H), jnp.float32)
    params = init_params(k_p, H, LABEL, para_init=0.01)

    out = jax.block_until_ready(atten_forward(sent1, sent2, params))
    ref = atten_reference(sent1, sent2, params)

    assert out.shape == (B, LABEL)
    assert bool(jnp.all(jnp.isfinite(out)))
    # Tolerance loosened for the bf16 MXU path + approx-EUP reciprocal in the
    # attention softmax (final log-softmax itself is exact f32).
    assert jnp.allclose(out, ref, rtol=2e-2, atol=2e-3), "mismatch vs reference"

    print("KERNEL_OK")
</pallas_src>

<mosaic_0001>
module attributes {stable_mosaic.version = 11 : i64} {
  func.func @atten_fused_kernel(%arg0: i32, %arg1: memref<2x16x128xbf16, #tpu.memory_space<vmem>>, %arg2: memref<8x128x128xbf16, #tpu.memory_space<vmem>>, %arg3: memref<6x128xf32, #tpu.memory_space<vmem>>, %arg4: memref<128x3xbf16, #tpu.memory_space<vmem>>, %arg5: memref<1x3xf32, #tpu.memory_space<vmem>>, %arg6: memref<2x3xf32, #tpu.memory_space<vmem>>) attributes {dimension_semantics = [#tpu.dimension_semantics<parallel>], iteration_bounds = array<i64: 1>, scalar_prefetch = 0 : i64, scratch_operands = 0 : i64, tpu.core_type = #tpu.core_type<tc>, window_params = [{transform_indices = @transform_0, window_bounds = array<i64: 2, 16, 128>}, {pipeline_mode = #tpu.pipeline_mode<synchronous>, transform_indices = @transform_1, window_bounds = array<i64: 8, 128, 128>}, {pipeline_mode = #tpu.pipeline_mode<synchronous>, transform_indices = @transform_2, window_bounds = array<i64: 6, 128>}, {pipeline_mode = #tpu.pipeline_mode<synchronous>, transform_indices = @transform_3, window_bounds = array<i64: 128, 3>}, {pipeline_mode = #tpu.pipeline_mode<synchronous>, transform_indices = @transform_4, window_bounds = array<i64: 1, 3>}, {transform_indices = @transform_5, window_bounds = array<i64: 2, 3>}]} {
    %c0 = arith.constant 0 : index
    %c0_0 = arith.constant 0 : index
    %c0_1 = arith.constant 0 : index
    %0 = vector.load %arg2[%c0, %c0_0, %c0_1] : memref<8x128x128xbf16, #tpu.memory_space<vmem>>, vector<1x128x128xbf16>
    %1 = vector.shape_cast %0 : vector<1x128x128xbf16> to vector<128x128xbf16>
    %c1 = arith.constant 1 : index
    %c0_2 = arith.constant 0 : index
    %c0_3 = arith.constant 0 : index
    %2 = vector.load %arg2[%c1, %c0_2, %c0_3] : memref<8x128x128xbf16, #tpu.memory_space<vmem>>, vector<1x128x128xbf16>
    %3 = vector.shape_cast %2 : vector<1x128x128xbf16> to vector<128x128xbf16>
    %c2 = arith.constant 2 : index
    %c0_4 = arith.constant 0 : index
    %c0_5 = arith.constant 0 : index
    %4 = vector.load %arg2[%c2, %c0_4, %c0_5] : memref<8x128x128xbf16, #tpu.memory_space<vmem>>, vector<1x128x128xbf16>
    %5 = vector.shape_cast %4 : vector<1x128x128xbf16> to vector<128x128xbf16>
    %c3 = arith.constant 3 : index
    %c0_6 = arith.constant 0 : index
    %c0_7 = arith.constant 0 : index
    %6 = vector.load %arg2[%c3, %c0_6, %c0_7] : memref<8x128x128xbf16, #tpu.memory_space<vmem>>, vector<1x128x128xbf16>
    %7 = vector.shape_cast %6 : vector<1x128x128xbf16> to vector<128x128xbf16>
    %c4 = arith.constant 4 : index
    %c0_8 = arith.constant 0 : index
    %c0_9 = arith.constant 0 : index
    %8 = vector.load %arg2[%c4, %c0_8, %c0_9] : memref<8x128x128xbf16, #tpu.memory_space<vmem>>, vector<1x128x128xbf16>
    %9 = vector.shape_cast %8 : vector<1x128x128xbf16> to vector<128x128xbf16>
    %c5 = arith.constant 5 : index
    %c0_10 = arith.constant 0 : index
    %c0_11 = arith.constant 0 : index
    %10 = vector.load %arg2[%c5, %c0_10, %c0_11] : memref<8x128x128xbf16, #tpu.memory_space<vmem>>, vector<1x128x128xbf16>
    %11 = vector.shape_cast %10 : vector<1x128x128xbf16> to vector<128x128xbf16>
    %c6 = arith.constant 6 : index
    %c0_12 = arith.constant 0 : index
    %c0_13 = arith.constant 0 : index
    %12 = vector.load %arg2[%c6, %c0_12, %c0_13] : memref<8x128x128xbf16, #tpu.memory_space<vmem>>, vector<1x128x128xbf16>
    %13 = vector.shape_cast %12 : vector<1x128x128xbf16> to vector<128x128xbf16>
    %c7 = arith.constant 7 : index
    %c0_14 = arith.constant 0 : index
    %c0_15 = arith.constant 0 : index
    %14 = vector.load %arg2[%c7, %c0_14, %c0_15] : memref<8x128x128xbf16, #tpu.memory_space<vmem>>, vector<1x128x128xbf16>
    %15 = vector.shape_cast %14 : vector<1x128x128xbf16> to vector<128x128xbf16>
    %c0_16 = arith.constant 0 : index
    %c0_17 = arith.constant 0 : index
    %16 = vector.load %arg3[%c0_16, %c0_17] : memref<6x128xf32, #tpu.memory_space<vmem>>, vector<1x128xf32>
    %c1_18 = arith.constant 1 : index
    %c0_19 = arith.constant 0 : index
    %17 = vector.load %arg3[%c1_18, %c0_19] : memref<6x128xf32, #tpu.memory_space<vmem>>, vector<1x128xf32>
    %c2_20 = arith.constant 2 : index
    %c0_21 = arith.constant 0 : index
    %18 = vector.load %arg3[%c2_20, %c0_21] : memref<6x128xf32, #tpu.memory_space<vmem>>, vector<1x128xf32>
    %c3_22 = arith.constant 3 : index
    %c0_23 = arith.constant 0 : index
    %19 = vector.load %arg3[%c3_22, %c0_23] : memref<6x128xf32, #tpu.memory_space<vmem>>, vector<1x128xf32>
    %c4_24 = arith.constant 4 : index
    %c0_25 = arith.constant 0 : index
    %20 = vector.load %arg3[%c4_24, %c0_25] : memref<6x128xf32, #tpu.memory_space<vmem>>, vector<1x128xf32>
    %c5_26 = arith.constant 5 : index
    %c0_27 = arith.constant 0 : index
    %21 = vector.load %arg3[%c5_26, %c0_27] : memref<6x128xf32, #tpu.memory_space<vmem>>, vector<1x128xf32>
    %c0_28 = arith.constant 0 : index
    %c0_29 = arith.constant 0 : index
    %c0_30 = arith.constant 0 : index
    %22 = vector.load %arg1[%c0_28, %c0_29, %c0_30] : memref<2x16x128xbf16, #tpu.memory_space<vmem>>, vector<2x16x128xbf16>
    %23 = vector.shape_cast %22 : vector<2x16x128xbf16> to vector<32x128xbf16>
    %24 = vector.extract_strided_slice %22 {offsets = [0, 0, 0], sizes = [2, 8, 128], strides = [1, 1, 1]} : vector<2x16x128xbf16> to vector<2x8x128xbf16>
    %25 = vector.extract_strided_slice %22 {offsets = [0, 8, 0], sizes = [2, 8, 128], strides = [1, 1, 1]} : vector<2x16x128xbf16> to vector<2x8x128xbf16>
    %cst = arith.constant dense<0.000000e+00> : vector<32x128xf32>
    %26 = tpu.matmul %23, %1, %cst {dimension_numbers = #tpu.dot_dimension_numbers<[1], [0], [0], [1], [0, 0, 1, 1], [], []>} : vector<32x128xbf16>, vector<128x128xbf16>, vector<32x128xf32> -> vector<32x128xf32>
    %27 = vector.broadcast %16 : vector<1x128xf32> to vector<32x128xf32>
    %28 = arith.addf %26, %27 : vector<32x128xf32>
    %cst_31 = arith.constant 0.000000e+00 : f32
    %29 = vector.broadcast %cst_31 : f32 to vector<32x128xf32>
    %30 = arith.maximumf %28, %29 : vector<32x128xf32>
    %31 = arith.truncf %30 : vector<32x128xf32> to vector<32x128xbf16>
    %cst_32 = arith.constant dense<0.000000e+00> : vector<32x128xf32>
    %32 = tpu.matmul %31, %3, %cst_32 {dimension_numbers = #tpu.dot_dimension_numbers<[1], [0], [0], [1], [0, 0, 1, 1], [], []>} : vector<32x128xbf16>, vector<128x128xbf16>, vector<32x128xf32> -> vector<32x128xf32>
    %33 = vector.broadcast %17 : vector<1x128xf32> to vector<32x128xf32>
    %34 = arith.addf %32, %33 : vector<32x128xf32>
    %cst_33 = arith.constant 0.000000e+00 : f32
    %35 = vector.broadcast %cst_33 : f32 to vector<32x128xf32>
    %36 = arith.maximumf %34, %35 : vector<32x128xf32>
    %37 = arith.truncf %36 : vector<32x128xf32> to vector<32x128xbf16>
    %38 = vector.shape_cast %37 : vector<32x128xbf16> to vector<2x16x128xbf16>
    %39 = vector.extract_strided_slice %38 {offsets = [0, 0, 0], sizes = [2, 8, 128], strides = [1, 1, 1]} : vector<2x16x128xbf16> to vector<2x8x128xbf16>
    %40 = vector.extract_strided_slice %38 {offsets = [0, 8, 0], sizes = [2, 8, 128], strides = [1, 1, 1]} : vector<2x16x128xbf16> to vector<2x8x128xbf16>
    "tpu.trace_start"() <{level = 10 : i32, message = "bik,bjk->bij"}> : () -> ()
    %cst_34 = arith.constant dense<0.000000e+00> : vector<2x8x8xf32>
    %41 = tpu.matmul %39, %40, %cst_34 {dimension_numbers = #tpu.dot_dimension_numbers<[2], [2], [1], [1], [0, 0, 0, 1, 1, 1], [0], [0]>} : vector<2x8x128xbf16>, vector<2x8x128xbf16>, vector<2x8x8xf32> -> vector<2x8x8xf32>
    "tpu.trace_stop"() : () -> ()
    %42 = tpu.transpose %41, [0, 2, 1] : vector<2x8x8xf32> -> vector<2x8x8xf32>
    %cst_35 = arith.constant dense<0xFF800000> : vector<2x8xf32>
    %43 = vector.multi_reduction <maximumf>, %41, %cst_35 [2] : vector<2x8x8xf32> to vector<2x8xf32>
    %44 = vector.shape_cast %43 : vector<2x8xf32> to vector<2x8x1xf32>
    %45 = vector.broadcast %44 : vector<2x8x1xf32> to vector<2x8x8xf32>
    %46 = arith.subf %41, %45 : vector<2x8x8xf32>
    %47 = math.exp %46 : vector<2x8x8xf32>
    %cst_36 = arith.constant dense<0.000000e+00> : vector<2x8xf32>
    %48 = vector.multi_reduction <add>, %47, %cst_36 [2] : vector<2x8x8xf32> to vector<2x8xf32>
    %49 = vector.shape_cast %48 : vector<2x8xf32> to vector<2x8x1xf32>
    %50 = tpu.reciprocal %49 {approx = true} : vector<2x8x1xf32> -> vector<2x8x1xf32>
    %51 = vector.broadcast %50 : vector<2x8x1xf32> to vector<2x8x8xf32>
    %52 = arith.mulf %47, %51 : vector<2x8x8xf32>
    %53 = arith.truncf %52 : vector<2x8x8xf32> to vector<2x8x8xbf16>
    %cst_37 = arith.constant dense<0xFF800000> : vector<2x8xf32>
    %54 = vector.multi_reduction <maximumf>, %42, %cst_37 [2] : vector<2x8x8xf32> to vector<2x8xf32>
    %55 = vector.shape_cast %54 : vector<2x8xf32> to vector<2x8x1xf32>
    %56 = vector.broadcast %55 : vector<2x8x1xf32> to vector<2x8x8xf32>
    %57 = arith.subf %42, %56 : vector<2x8x8xf32>
    %58 = math.exp %57 : vector<2x8x8xf32>
    %cst_38 = arith.constant dense<0.000000e+00> : vector<2x8xf32>
    %59 = vector.multi_reduction <add>, %58, %cst_38 [2] : vector<2x8x8xf32> to vector<2x8xf32>
    %60 = vector.shape_cast %59 : vector<2x8xf32> to vector<2x8x1xf32>
    %61 = tpu.reciprocal %60 {approx = true} : vector<2x8x1xf32> -> vector<2x8x1xf32>
    %62 = vector.broadcast %61 : vector<2x8x1xf32> to vector<2x8x8xf32>
    %63 = arith.mulf %58, %62 : vector<2x8x8xf32>
    %64 = arith.truncf %63 : vector<2x8x8xf32> to vector<2x8x8xbf16>
    "tpu.trace_start"() <{level = 10 : i32, message = "bij,bjk->bik"}> : () -> ()
    %cst_39 = arith.constant dense<0.000000e+00> : vector<2x8x128xf32>
    %65 = tpu.matmul %53, %25, %cst_39 {dimension_numbers = #tpu.dot_dimension_numbers<[2], [1], [1], [2], [0, 0, 0, 1, 1, 2], [0], [0]>} : vector<2x8x8xbf16>, vector<2x8x128xbf16>, vector<2x8x128xf32> -> vector<2x8x128xf32>
    %cst_40 = arith.constant dense<0.000000e+00> : vector<2x8x128xf32>
    %66 = tpu.matmul %64, %24, %cst_40 {dimension_numbers = #tpu.dot_dimension_numbers<[2], [1], [1], [2], [0, 0, 0, 1, 1, 2], [0], [0]>} : vector<2x8x8xbf16>, vector<2x8x128xbf16>, vector<2x8x128xf32> -> vector<2x8x128xf32>
    "tpu.trace_stop"() : () -> ()
    %67 = tpu.concatenate %65, %66 in 1 : vector<2x8x128xf32>, vector<2x8x128xf32> -> vector<2x16x128xf32>
    %68 = arith.truncf %67 : vector<2x16x128xf32> to vector<2x16x128xbf16>
    %69 = vector.shape_cast %68 : vector<2x16x128xbf16> to vector<32x128xbf16>
    %cst_41 = arith.constant dense<0.000000e+00> : vector<32x128xf32>
    %70 = tpu.matmul %23, %5, %cst_41 {dimension_numbers = #tpu.dot_dimension_numbers<[1], [0], [0], [1], [0, 0, 1, 1], [], []>} : vector<32x128xbf16>, vector<128x128xbf16>, vector<32x128xf32> -> vector<32x128xf32>
    %cst_42 = arith.constant dense<0.000000e+00> : vector<32x128xf32>
    %71 = tpu.matmul %69, %7, %cst_42 {dimension_numbers = #tpu.dot_dimension_numbers<[1], [0], [0], [1], [0, 0, 1, 1], [], []>} : vector<32x128xbf16>, vector<128x128xbf16>, vector<32x128xf32> -> vector<32x128xf32>
    %72 = arith.addf %70, %71 : vector<32x128xf32>
    %73 = vector.broadcast %18 : vector<1x128xf32> to vector<32x128xf32>
    %74 = arith.addf %72, %73 : vector<32x128xf32>
    %cst_43 = arith.constant 0.000000e+00 : f32
    %75 = vector.broadcast %cst_43 : f32 to vector<32x128xf32>
    %76 = arith.maximumf %74, %75 : vector<32x128xf32>
    %77 = arith.truncf %76 : vector<32x128xf32> to vector<32x128xbf16>
    %cst_44 = arith.constant dense<0.000000e+00> : vector<32x128xf32>
    %78 = tpu.matmul %77, %9, %cst_44 {dimension_numbers = #tpu.dot_dimension_numbers<[1], [0], [0], [1], [0, 0, 1, 1], [], []>} : vector<32x128xbf16>, vector<128x128xbf16>, vector<32x128xf32> -> vector<32x128xf32>
    %79 = vector.broadcast %19 : vector<1x128xf32> to vector<32x128xf32>
    %80 = arith.addf %78, %79 : vector<32x128xf32>
    %cst_45 = arith.constant 0.000000e+00 : f32
    %81 = vector.broadcast %cst_45 : f32 to vector<32x128xf32>
    %82 = arith.maximumf %80, %81 : vector<32x128xf32>
    %83 = vector.shape_cast %82 : vector<32x128xf32> to vector<2x16x128xf32>
    %84 = vector.extract_strided_slice %83 {offsets = [0, 0, 0], sizes = [2, 8, 128], strides = [1, 1, 1]} : vector<2x16x128xf32> to vector<2x8x128xf32>
    %cst_46 = arith.constant dense<0.000000e+00> : vector<2x128xf32>
    %85 = vector.multi_reduction <add>, %84, %cst_46 [1] : vector<2x8x128xf32> to vector<2x128xf32>
    %86 = vector.extract_strided_slice %83 {offsets = [0, 8, 0], sizes = [2, 8, 128], strides = [1, 1, 1]} : vector<2x16x128xf32> to vector<2x8x128xf32>
    %cst_47 = arith.constant dense<0.000000e+00> : vector<2x128xf32>
    %87 = vector.multi_reduction <add>, %86, %cst_47 [1] : vector<2x8x128xf32> to vector<2x128xf32>
    %88 = arith.truncf %85 : vector<2x128xf32> to vector<2x128xbf16>
    %cst_48 = arith.constant dense<0.000000e+00> : vector<2x128xf32>
    %89 = tpu.matmul %88, %11, %cst_48 {dimension_numbers = #tpu.dot_dimension_numbers<[1], [0], [0], [1], [0, 0, 1, 1], [], []>} : vector<2x128xbf16>, vector<128x128xbf16>, vector<2x128xf32> -> vector<2x128xf32>
    %90 = arith.truncf %87 : vector<2x128xf32> to vector<2x128xbf16>
    %cst_49 = arith.constant dense<0.000000e+00> : vector<2x128xf32>
    %91 = tpu.matmul %90, %13, %cst_49 {dimension_numbers = #tpu.dot_dimension_numbers<[1], [0], [0], [1], [0, 0, 1, 1], [], []>} : vector<2x128xbf16>, vector<128x128xbf16>, vector<2x128xf32> -> vector<2x128xf32>
    %92 = arith.addf %89, %91 : vector<2x128xf32>
    %93 = vector.broadcast %20 : vector<1x128xf32> to vector<2x128xf32>
    %94 = arith.addf %92, %93 : vector<2x128xf32>
    %cst_50 = arith.constant 0.000000e+00 : f32
    %95 = vector.broadcast %cst_50 : f32 to vector<2x128xf32>
    %96 = arith.maximumf %94, %95 : vector<2x128xf32>
    %97 = arith.truncf %96 : vector<2x128xf32> to vector<2x128xbf16>
    %cst_51 = arith.constant dense<0.000000e+00> : vector<2x128xf32>
    %98 = tpu.matmul %97, %15, %cst_51 {dimension_numbers = #tpu.dot_dimension_numbers<[1], [0], [0], [1], [0, 0, 1, 1], [], []>} : vector<2x128xbf16>, vector<128x128xbf16>, vector<2x128xf32> -> vector<2x128xf32>
    %99 = vector.broadcast %21 : vector<1x128xf32> to vector<2x128xf32>
    %100 = arith.addf %98, %99 : vector<2x128xf32>
    %cst_52 = arith.constant 0.000000e+00 : f32
    %101 = vector.broadcast %cst_52 : f32 to vector<2x128xf32>
    %102 = arith.maximumf %100, %101 : vector<2x128xf32>
    %103 = arith.truncf %102 : vector<2x128xf32> to vector<2x128xbf16>
    %c0_53 = arith.constant 0 : index
    %c0_54 = arith.constant 0 : index
    %104 = vector.load %arg4[%c0_53, %c0_54] : memref<128x3xbf16, #tpu.memory_space<vmem>>, vector<128x3xbf16>
    %cst_55 = arith.constant dense<0.000000e+00> : vector<2x3xf32>
    %105 = tpu.matmul %103, %104, %cst_55 {dimension_numbers = #tpu.dot_dimension_numbers<[1], [0], [0], [1], [0, 0, 1, 1], [], []>} : vector<2x128xbf16>, vector<128x3xbf16>, vector<2x3xf32> -> vector<2x3xf32>
    %c0_56 = arith.constant 0 : index
    %c0_57 = arith.constant 0 : index
    %106 = vector.load %arg5[%c0_56, %c0_57] : memref<1x3xf32, #tpu.memory_space<vmem>>, vector<1x3xf32>
    %107 = vector.broadcast %106 : vector<1x3xf32> to vector<2x3xf32>
    %108 = arith.addf %105, %107 : vector<2x3xf32>
    %cst_58 = arith.constant dense<0xFF800000> : vector<2xf32>
    %109 = vector.multi_reduction <maximumf>, %108, %cst_58 [1] : vector<2x3xf32> to vector<2xf32>
    %110 = vector.shape_cast %109 : vector<2xf32> to vector<2x1xf32>
    %111 = vector.broadcast %110 : vector<2x1xf32> to vector<2x3xf32>
    %112 = arith.subf %108, %111 : vector<2x3xf32>
    %113 = math.exp %112 : vector<2x3xf32>
    %cst_59 = arith.constant dense<0.000000e+00> : vector<2xf32>
    %114 = vector.multi_reduction <add>, %113, %cst_59 [1] : vector<2x3xf32> to vector<2xf32>
    %115 = vector.shape_cast %114 : vector<2xf32> to vector<2x1xf32>
    %116 = math.log %115 : vector<2x1xf32>
    %117 = vector.broadcast %116 : vector<2x1xf32> to vector<2x3xf32>
    %118 = arith.subf %112, %117 : vector<2x3xf32>
    %c0_60 = arith.constant 0 : index
    %c0_61 = arith.constant 0 : index
    %119 = vector.load %arg6[%c0_60, %c0_61] : memref<2x3xf32, #tpu.memory_space<vmem>>, vector<2x3xf32>
    tpu.vector_store %arg6[%c0_60, %c0_61], %118 {strides = array<i32>} : memref<2x3xf32, #tpu.memory_space<vmem>>, vector<2x3xf32>,
    return
  }
  func.func @transform_0(%arg0: i32) -> (i32, i32, i32) {
    %c0_i32 = arith.constant 0 : i32
    %c0_i32_0 = arith.constant 0 : i32
    %c0_i32_1 = arith.constant 0 : i32
    return %arg0, %c0_i32, %c0_i32_0 : i32, i32, i32
  }
  func.func @transform_1(%arg0: i32) -> (i32, i32, i32) {
    %c0_i32 = arith.constant 0 : i32
    %c0_i32_0 = arith.constant 0 : i32
    %c0_i32_1 = arith.constant 0 : i32
    %c0_i32_2 = arith.constant 0 : i32
    return %c0_i32, %c0_i32_0, %c0_i32_1 : i32, i32, i32
  }
  func.func @transform_2(%arg0: i32) -> (i32, i32) {
    %c0_i32 = arith.constant 0 : i32
    %c0_i32_0 = arith.constant 0 : i32
    %c0_i32_1 = arith.constant 0 : i32
    return %c0_i32, %c0_i32_0 : i32, i32
  }
  func.func @transform_3(%arg0: i32) -> (i32, i32) {
    %c0_i32 = arith.constant 0 : i32
    %c0_i32_0 = arith.constant 0 : i32
    %c0_i32_1 = arith.constant 0 : i32
    return %c0_i32, %c0_i32_0 : i32, i32
  }
  func.func @transform_4(%arg0: i32) -> (i32, i32) {
    %c0_i32 = arith.constant 0 : i32
    %c0_i32_0 = arith.constant 0 : i32
    %c0_i32_1 = arith.constant 0 : i32
    return %c0_i32, %c0_i32_0 : i32, i32
  }
  func.func @transform_5(%arg0: i32) -> (i32, i32) {
    %c0_i32 = arith.constant 0 : i32
    %c0_i32_0 = arith.constant 0 : i32
    return %arg0, %c0_i32 : i32, i32
  }
}

</mosaic_0001>

<bundles_post_ra>
// kernel: tpu_custom_call.1
= control target key start
LH: loop header
LB: loop body
LE: loop exit
PB: predicated region body
PF: predicated region fallthrough
CT: control target
= control target key end

     0   :  { %10 = vsyncpa [#allocation3], 0  ;;  %s2335_s0 = inlined_call_operand.vmem [shape: bf16[2,16,128], index: 0, kind: input, shape index: {}]   ;;  %s2336_s1 = inlined_call_operand.hbm [shape: bf16[8,128,128], index: 1, kind: input, shape index: {}]   ;;  %s2337_s2 = inlined_call_operand.vmem [shape: f32[6,128], index: 2, kind: input, shape index: {}]   ;;  %s2338_s3 = inlined_call_operand.vmem [shape: bf16[128,3], index: 3, kind: input, shape index: {}]   ;;  %s2339_s4 = inlined_call_operand.vmem [shape: f32[1,3], index: 4, kind: input, shape index: {}]   ;;  %s2340_s5 = inlined_call_operand.hbm [shape: f32[2,3], index: 5, kind: output, shape index: {}]  }
   0x1   :  { %11 = vsyncpa [#allocation4], 0  ;;  %s2117_s18 = smov [#allocation2]   ;;  %s2069_s22 = scalar_lea.hbm %s2336_s1, 8192 }
   0x2   :  { %s19_s19 = sshll.u32 %s2117_s18, 4  ;;  %p2070_p0 = scmp.ne.s32.totalorder %s2336_s1, %s2069_s22  ;;  %s20_s19 = int_to_ptr.vmem [resolvable:$true] %s19_s19 }
   0x3   :  { %p2073_p1 = scmp.lt.u32.totalorder %s2069_s22, %s2336_s1 }
   0x5   :  { %p2075_p2 = pnand %p2073_p1, %p2070_p0 }
   0x7   :  { %2078 = shalt.err (!%p2075_p2)
}
   0x8   :  { %s2079_s27 = scalar_lea.vmem %s20_s19, 8192  ;;  %p2084_p4 = scmp.lt.s32.totalorder %s20_s19, %s20_s19 }
   0x9   :  { %p2080_p3 = scmp.ne.s32.totalorder %s20_s19, %s2079_s27  ;;  %p2085_p5 = scmp.lt.s32.totalorder %s2079_s27, %s2079_s27 }
   0xb   :  { %p2086_p6 = por %p2085_p5, %p2084_p4 }
   0xd   :  { %p2087_p7 = pnand %p2086_p6, %p2080_p3 }
   0xf   :  { %2090 = shalt.err (!%p2087_p7)
}
  0x10   :  { %s2118_s28 = smov 64   ;;  %s2119_s29 = smov 4  }
  0x11   :  { %25 = dma.hbm_to_vmem [thread:$0]  %s2336_s1, 8192, %s20_s19, [#allocation3], %s2118_s28, %s2118_s28, %s2119_s29  }
  0x12   :  { %2113 = dma.done.wait [#allocation3], 8192  }
  0x13   :  { %2114 = vsyncadd [#allocation3], 4294959104  ;;  %v1975_v0 = vld [vmem:[#allocation2] sm:$0xff]   ;;  %v1976_v1 = vld [vmem:[#allocation2 + $0x8] sm:$0xff]   ;;  %v2120_v37 = vmov 0.0   ;;  %vm2121_vm0 = vmmov 0  }
  0x14   :  { %1749 = vmatprep.subr.bf16.mxu0 %v1975_v0  ;;  %v1977_v2 = vld [vmem:[#allocation2 + $0x10] sm:$0xff]   ;;  %v1978_v3 = vld [vmem:[#allocation2 + $0x18] sm:$0xff]   ;;  %v2168_v4 = vld [vmem:[%s2335_s0] sm:$0xf]  ;;  %vm557_vm1 = vcmask 64512   ;;  %vm609_vm2 = vcmask 1043456  }
  0x15   :  { %1750 = vmatpush3.bf16.msra.mxu0 %v1975_v0  ;;  %v2173_v5 = vld [vmem:[%s2335_s0 + $0x4] sm:$0xf]  ;;  %v1986_v8 = vld [vmem:[#allocation2 + $0x48] sm:$0xff]   ;;  %v1987_v10 = vld [vmem:[#allocation2 + $0x50] sm:$0xff]   ;;  %vm1138_vm3 = vcmask 1041409   ;;  %vm1537_vm4 = vcmask 17408  }
  0x16   :  { %1751 = vmatprep.subr.bf16.mxu0 %v1976_v1  ;;  %v2177_v6 = vcombine.low %v2168_v4, %v2173_v5  ;;  %v1985_v7 = vld [vmem:[#allocation2 + $0x40] sm:$0xff]   ;;  %v1980_v11 = vld [vmem:[#allocation2 + $0x28] sm:$0xff]   ;;  %v1988_v12 = vld [vmem:[#allocation2 + $0x58] sm:$0xff]  }
  0x17   :  { %v1979_v9 = vld [vmem:[#allocation2 + $0x20] sm:$0xff]   ;;  %1769 = vmatprep.subr.bf16.mxu1 %v1985_v7  ;;  %v1981_v13 = vld [vmem:[#allocation2 + $0x30] sm:$0xff]   ;;  %v1982_v15 = vld [vmem:[#allocation2 + $0x38] sm:$0xff]  }
  0x18   :  { %1765 = vmatprep.mubr.bf16.mxu0 %v2177_v6  ;;  %1770 = vmatpush3.bf16.msra.mxu1 %v1985_v7  ;;  %v1989_v14 = vld [vmem:[#allocation2 + $0x60] sm:$0xff]   ;;  %v1990_v16 = vld [vmem:[#allocation2 + $0x68] sm:$0xff]   ;;  %v1991_v20 = vld [vmem:[#allocation2 + $0x70] sm:$0xff]  }
  0x19   :  { %1752 = vmatpush3.bf16.msra.mxu0 %v1976_v1  ;;  %1771 = vmatprep.subr.bf16.mxu1 %v1986_v8  ;;  %v2183_v17 = vld [vmem:[%s2335_s0 + $0x8] sm:$0xf]  ;;  %v2188_v18 = vld [vmem:[%s2335_s0 + $0xc] sm:$0xf]  ;;  %v1992_v21 = vld [vmem:[#allocation2 + $0x78] sm:$0xff]  }
  0x1a   :  { %1753 = vmatprep.subr.bf16.mxu0 %v1977_v2  ;;  %v2192_v19 = vcombine.low %v2183_v17, %v2188_v18  ;;  %v1566_v22 = vld [vmem:[%s2337_s2] ss:$0 sm:$0xff]  ;;  %v1577_v38 = vld [vmem:[%s2337_s2 + $0x1] ss:$0 sm:$0xff] }
  0x1c   :  { %1772 = vmatpush3.bf16.msra.mxu1 %v1986_v8 }
  0x1d   :  { %1754 = vmatpush3.bf16.msra.mxu0 %v1977_v2  ;;  %1773 = vmatprep.subr.bf16.mxu1 %v1987_v10 }
  0x1e   :  { %1755 = vmatprep.subr.bf16.mxu0 %v1978_v3 }
  0x20   :  { %1774 = vmatpush3.bf16.msra.mxu1 %v1987_v10 }
  0x21   :  { %1756 = vmatpush3.bf16.msra.mxu0 %v1978_v3  ;;  %1775 = vmatprep.subr.bf16.mxu1 %v1988_v12 }
  0x22   :  { %1757 = vmatprep.subr.bf16.mxu0 %v1979_v9 }
  0x24   :  { %1776 = vmatpush3.bf16.msra.mxu1 %v1988_v12 }
  0x25   :  { %1758 = vmatpush3.bf16.msra.mxu0 %v1979_v9  ;;  %1777 = vmatprep.subr.bf16.mxu1 %v1989_v14 }
  0x26   :  { %1759 = vmatprep.subr.bf16.mxu0 %v1980_v11 }
  0x28   :  { %1778 = vmatpush3.bf16.msra.mxu1 %v1989_v14 }
  0x29   :  { %1760 = vmatpush3.bf16.msra.mxu0 %v1980_v11  ;;  %1779 = vmatprep.subr.bf16.mxu1 %v1990_v16 }
  0x2a   :  { %1761 = vmatprep.subr.bf16.mxu0 %v1981_v13 }
  0x2c   :  { %1780 = vmatpush3.bf16.msra.mxu1 %v1990_v16 }
  0x2d   :  { %1762 = vmatpush3.bf16.msra.mxu0 %v1981_v13  ;;  %1781 = vmatprep.subr.bf16.mxu1 %v1991_v20 }
  0x2e   :  { %1763 = vmatprep.subr.bf16.mxu0 %v1982_v15 }
  0x30   :  { %1782 = vmatpush3.bf16.msra.mxu1 %v1991_v20 }
  0x31   :  { %1764 = vmatpush3.bf16.msra.mxu0 %v1982_v15  ;;  %1783 = vmatprep.subr.bf16.mxu1 %v1992_v21 }
  0x32   :  { %1813 = vmatprep.subr.bf16.mxu0 %v2120_v37 }
  0x34   :  { %1766 = vmatmul.mubr.bf16.vlgmr.msra.gmra.mrb[0].mxu0 %v2192_v19  ;;  %1784 = vmatpush3.bf16.msra.mxu1 %v1992_v21  ;;  %v611_v21 = vsel %vm609_vm2, %v2173_v5, 0 }
  0x35   :  { %1789 = vmatprep.subr.bf16.mxu1 %v2120_v37  ;;  %1815 = vmatprep.mubr.msk.bf16.mxu0 %vm2121_vm0, %v2120_v37 }
 0x107   :  { %v1767_v23 = vpop.f32.mrb[0].mxu0 }
 0x108   :  { %v288_v24 = vadd.f32 %v1767_v23, %v1566_v22  ;;  %v279_v25 = vpop.f32.mrb[1].mxu0 }
 0x109   :  { %v280_v26 = vadd.f32 %v1566_v22, %v279_v25  ;;  %v1768_v27 = vpop.f32.mrb[2].mxu0 }
 0x10a   :  { %v291_v28 = vadd.f32 %v1768_v27, %v1566_v22  ;;  %v282_v29 = vpop.f32.mrb[3].mxu0  ;;  %v296_v31 = vmax.f32 %v288_v24, 0.0 }
 0x10b   :  { %v283_v30 = vadd.f32 %v1566_v22, %v282_v29  ;;  %v294_v33 = vmax.f32 %v280_v26, 0.0 }
 0x10c   :  { %v297_v32 = vmax.f32 %v291_v28, 0.0 }
 0x10d   :  { %v295_v34 = vmax.f32 %v283_v30, 0.0 }
 0x10e   :  { %v299_v35 = vpack.c.bf16 %v297_v32, %v296_v31 }
 0x10f   :  { %v298_v36 = vpack.c.bf16 %v295_v34, %v294_v33 }
 0x111   :  { %1785 = vmatprep.mubr.bf16.mxu1 %v298_v36 }
 0x112   :  { %1786 = vmatmul.mubr.bf16.vlgmr.msra.gmra.mrb[0].mxu1 %v299_v35  ;;  %v703_v35 = vsel %vm609_vm2, %v2168_v4, 0  ;;  %v1993_v4 = vld [vmem:[#allocation2 + $0xc0] sm:$0xff]  }
 0x113   :  { %1791 = vmatprep.mubr.msk.bf16.mxu1 %vm2121_vm0, %v2120_v37  ;;  %1814 = vmatpush3.bf16.msra.mxu0 %v703_v35 }
 0x114   :  { %1825 = vmatprep.subr.bf16.mxu0 %v1993_v4 }
 0x1e5   :  { %v1787_v39 = vpop.f32.mrb[0].mxu1 }
 0x1e6   :  { %v395_v40 = vadd.f32 %v1787_v39, %v1577_v38  ;;  %v386_v41 = vpop.f32.mrb[1].mxu1 }
 0x1e7   :  { %v387_v42 = vadd.f32 %v1577_v38, %v386_v41  ;;  %v1788_v43 = vpop.f32.mrb[2].mxu1 }
 0x1e8   :  { %v398_v44 = vadd.f32 %v1788_v43, %v1577_v38  ;;  %v389_v45 = vpop.f32.mrb[3].mxu1  ;;  %v403_v47 = vmax.f32 %v395_v40, 0.0 }
 0x1e9   :  { %v390_v46 = vadd.f32 %v1577_v38, %v389_v45  ;;  %v401_v49 = vmax.f32 %v387_v42, 0.0  ;;  %v657_v38 = vsel %vm609_vm2, %v2188_v18, 0  ;;  %v749_v42 = vsel %vm609_vm2, %v2183_v17, 0  ;;  %v1995_v17 = vld [vmem:[#allocation2 + $0xd0] sm:$0xff]  }
 0x1ea   :  { %v404_v48 = vmax.f32 %v398_v44, 0.0 }
 0x1eb   :  { %v402_v50 = vmax.f32 %v390_v46, 0.0 }
 0x1ec   :  { %v406_v51 = vpack.c.bf16 %v404_v48, %v403_v47  ;;  %v1994_v47 = vld [vmem:[#allocation2 + $0xc8] sm:$0xff]  }
 0x1ed   :  { %v405_v52 = vpack.c.bf16 %v402_v50, %v401_v49 }
 0x1ee   :  { %v451_v54 = vrot.slane %v406_v51, 4 }
 0x1ef   :  { %v408_v53 = vrot.slane %v405_v52, 4 }
 0x1f1   :  { %1790 = vmatpush3.bf16.xpose.msra.mxu1 %v408_v53  ;;  %v1998_v53 = vld [vmem:[#allocation2 + $0xe8] sm:$0xff]  }
 0x1f2   :  { %1795 = vmatprep.subr.bf16.mxu1 %v2120_v37 }
 0x1f8   :  { %1792 = vmatmul.mubr.bf16.vlgmr.msra.gmra.mrb[4].mxu1 %v405_v52  ;;  %v1997_v52 = vld [vmem:[#allocation2 + $0xe0] sm:$0xff]  }
 0x1f9   :  { %1796 = vmatpush3.bf16.xpose.msra.mxu1 %v451_v54  ;;  %1797 = vmatprep.mubr.msk.bf16.mxu1 %vm2121_vm0, %v2120_v37 }
 0x1fa   :  { %1801 = vmatprep.subr.bf16.mxu1 %v2120_v37 }
 0x200   :  { %1798 = vmatmul.mubr.bf16.vlgmr.msra.gmra.mrb[8].mxu1 %v406_v51  ;;  %v1996_v51 = vld [vmem:[#allocation2 + $0xd8] sm:$0xff]  }
 0x201   :  { %1803 = vmatprep.mubr.msk.bf16.mxu1 %vm2121_vm0, %v2120_v37  ;;  %1802 = vmatpush3.bf16.msra.mxu1 %v611_v21  ;;  %v2002_v21 = vld [vmem:[#allocation2 + $0x88] sm:$0xff]  }
 0x202   :  { %1807 = vmatprep.subr.bf16.mxu1 %v2120_v37 }
 0x2cb   :  { %v444_v55 = vpop.f32.mrb[4].mxu1 }
 0x2cc   :  { %493 = vxpose.xlu0.b32.start.end [1/1] (short) (narrow) %v444_v55, 8  ;;  %v1793_v56 = vpop.f32.mrb[5].mxu1  ;;  %v558_v57 = vsel %vm557_vm1, %v444_v55, -inf }
 0x2cd   :  { %559 = vmax.xlane.f32.xlu1 %v558_v57  ;;  %v447_v58 = vpop.f32.mrb[6].mxu1  ;;  %v1999_v56 = vld [vmem:[#allocation2 + $0xf0] sm:$0xff]  }
 0x2ce   :  { %v1794_v59 = vpop.f32.mrb[7].mxu1 }
 0x2cf   :  { %v2000_v59 = vld [vmem:[#allocation2 + $0xf8] sm:$0xff]  }
 0x2d3   :  { %v487_v60 = vpop.f32.mrb[8].mxu1 }
 0x2d4   :  { %525 = vxpose.xlu0.b32.start.end [1/1] (short) (narrow) %v487_v60, 8  ;;  %v1799_v61 = vpop.f32.mrb[9].mxu1  ;;  %v561_v62 = vsel %vm557_vm1, %v487_v60, -inf }
 0x2d5   :  { %562 = vmax.xlane.f32.xlu1 %v561_v62  ;;  %v490_v63 = vpop.f32.mrb[10].mxu1  ;;  %v2001_v62 = vld [vmem:[#allocation2 + $0x80] sm:$0xff]  }
 0x2d6   :  { %v1800_v0 = vpop.f32.mrb[11].mxu1 }
 0x34c   :  { %v509_v1 = vpop.trf.xlu0 }
 0x34d   :  { %v582_v2 = vsel %vm557_vm1, %v509_v1, -inf }
 0x34e   :  { %583 = vmax.xlane.f32.xlu0 %v582_v2  ;;  %v2010_v2 = vld [vmem:[#allocation2 + $0x108] sm:$0xff]  }
 0x354   :  { %v541_v3 = vpop.trf.xlu0 }
 0x355   :  { %v585_v7 = vsel %vm557_vm1, %v541_v3, -inf }
 0x356   :  { %586 = vmax.xlane.f32.xlu1 %v585_v7  ;;  %v2012_v7 = vld [vmem:[#allocation2 + $0x118] sm:$0xff]  }
 0x35a   :  { %v560_v8 = vpop.xlane.xlu1 %559 }
 0x35b   :  { %v564_v9 = vsub.f32 %v444_v55, %v560_v8  ;;  %v2013_v8 = vld [vmem:[#allocation2 + $0x120] sm:$0xff]  }
 0x35d   :  { %v566_v10 = vmul.f32 1.442695, %v564_v9  ;;  %v2014_v9 = vld [vmem:[#allocation2 + $0x128] sm:$0xff]  }
 0x35f   :  { %2049 = vpow2.f32 %v566_v10 }
 0x362   :  { %v563_v11 = vpop.xlane.xlu1 %562 }
 0x363   :  { %v565_v12 = vsub.f32 %v487_v60, %v563_v11 }
 0x365   :  { %v568_v13 = vmul.f32 1.442695, %v565_v12 }
 0x367   :  { %2051 = vpow2.f32 %v568_v13 }
 0x369   :  { %v2050_v14 = vpop.eup %2049 }
 0x36a   :  { %v570_v15 = vsel %vm557_vm1, %v2050_v14, 0.0 }
 0x36b   :  { %571 = vadd.xlane.f32.xlu1 %v570_v15 }
 0x371   :  { %v2052_v16 = vpop.eup %2051 }
 0x372   :  { %v573_v20 = vsel %vm557_vm1, %v2052_v16, 0.0 }
 0x373   :  { %574 = vadd.xlane.f32.xlu1 %v573_v20 }
 0x3db   :  { %v584_v22 = vpop.xlane.xlu0 %583 }
 0x3dc   :  { %v588_v23 = vsub.f32 %v509_v1, %v584_v22  ;;  %v2009_v1 = vld [vmem:[#allocation2 + $0x100] sm:$0xff]  }
 0x3de   :  { %v590_v24 = vmul.f32 1.442695, %v588_v23 }
 0x3e0   :  { %2053 = vpow2.f32 %v590_v24  ;;  %v2003_v24 = vld [vmem:[#allocation2 + $0x90] sm:$0xff]  }
 0x3e3   :  { %v587_v25 = vpop.xlane.xlu1 %586 }
 0x3e4   :  { %v589_v26 = vsub.f32 %v541_v3, %v587_v25  ;;  %v2011_v3 = vld [vmem:[#allocation2 + $0x110] sm:$0xff]   ;;  %v2004_v25 = vld [vmem:[#allocation2 + $0x98] sm:$0xff]  }
 0x3e6   :  { %v592_v27 = vmul.f32 1.442695, %v589_v26  ;;  %v2005_v26 = vld [vmem:[#allocation2 + $0xa0] sm:$0xff]  }
 0x3e8   :  { %2055 = vpow2.f32 %v592_v27  ;;  %v2006_v27 = vld [vmem:[#allocation2 + $0xa8] sm:$0xff]  }
 0x3ea   :  { %v2054_v28 = vpop.eup %2053 }
 0x3eb   :  { %v594_v29 = vsel %vm557_vm1, %v2054_v28, 0.0 }
 0x3ec   :  { %595 = vadd.xlane.f32.xlu1 %v594_v29  ;;  %v2008_v29 = vld [vmem:[#allocation2 + $0xb8] sm:$0xff]  }
 0x3f2   :  { %v2056_v30 = vpop.eup %2055 }
 0x3f3   :  { %v597_v31 = vsel %vm557_vm1, %v2056_v30, 0.0 }
 0x3f4   :  { %598 = vadd.xlane.f32.xlu1 %v597_v31  ;;  %v2017_v31 = vld [vmem:[#allocation2 + $0x140] sm:$0xff]  }
 0x3f8   :  { %v572_v5 = vpop.xlane.xlu1 %571 }
 0x3f9   :  { %2057 = vrcp.f32 %v572_v5  ;;  %v2019_v5 = vld [vmem:[#allocation2 + $0x148] sm:$0xff]  }
 0x400   :  { %v575_v32 = vpop.xlane.xlu1 %574 }
 0x401   :  { %2059 = vrcp.f32 %v575_v32 }
 0x403   :  { %v2058_v33 = vpop.eup %2057 }
 0x404   :  { %v578_v34 = vmul.f32 %v2058_v33, %v2050_v14 }
 0x406   :  { %v580_v36 = vpack.c.bf16 %v578_v34, %v578_v34 }
 0x408   :  { %1804 = vmatmul.mubr.msk.bf16.vlgmr.msra.gmra.mrb[12].mxu1 %vm557_vm1, %v580_v36 }
 0x409   :  { %1808 = vmatpush3.bf16.msra.mxu1 %v657_v38  ;;  %1809 = vmatprep.mubr.msk.bf16.mxu1 %vm2121_vm0, %v2120_v37 }
 0x40a   :  { %1819 = vmatprep.subr.bf16.mxu1 %v2120_v37 }
 0x40b   :  { %v2060_v39 = vpop.eup %2059 }
 0x40c   :  { %v579_v40 = vmul.f32 %v2060_v39, %v2052_v16 }
 0x40e   :  { %v581_v41 = vpack.c.bf16 %v579_v40, %v579_v40 }
 0x410   :  { %1810 = vmatmul.mubr.msk.bf16.vlgmr.msra.gmra.mrb[16].mxu1 %vm557_vm1, %v581_v41 }
 0x411   :  { %1820 = vmatpush3.bf16.msra.mxu1 %v749_v42  ;;  %1821 = vmatprep.mubr.msk.bf16.mxu1 %vm2121_vm0, %v2120_v37 }
 0x412   :  { %1865 = vmatprep.subr.bf16.mxu1 %v2009_v1 }
 0x479   :  { %v596_v18 = vpop.xlane.xlu1 %595 }
 0x47a   :  { %2061 = vrcp.f32 %v596_v18 }
 0x481   :  { %v599_v43 = vpop.xlane.xlu1 %598 }
 0x482   :  { %2063 = vrcp.f32 %v599_v43 }
 0x484   :  { %v2062_v44 = vpop.eup %2061 }
 0x485   :  { %v602_v45 = vmul.f32 %v2062_v44, %v2054_v28  ;;  %v2007_v28 = vld [vmem:[#allocation2 + $0xb0] sm:$0xff]  }
 0x487   :  { %v604_v46 = vpack.c.bf16 %v602_v45, %v602_v45  ;;  %v2018_v45 = vld [vmem:[#allocation2 + $0x180] sm:$0xff]  }
 0x489   :  { %1816 = vmatmul.mubr.msk.bf16.vlgmr.msra.gmra.mrb[4].mxu0 %vm557_vm1, %v604_v46  ;;  %v2020_v46 = vld [vmem:[#allocation2 + $0x188] sm:$0xff]  }
 0x48a   :  { %1826 = vmatpush3.bf16.msra.mxu0 %v1993_v4 }
 0x48b   :  { %1827 = vmatprep.subr.bf16.mxu0 %v1994_v47 }
 0x48c   :  { %v2064_v48 = vpop.eup %2063 }
 0x48d   :  { %v603_v49 = vmul.f32 %v2064_v48, %v2056_v30  ;;  %v2016_v30 = vld [vmem:[#allocation2 + $0x138] sm:$0xff]  }
 0x48e   :  { %1828 = vmatpush3.bf16.msra.mxu0 %v1994_v47  ;;  %v2021_v47 = vld [vmem:[#allocation2 + $0x150] sm:$0xff]   ;;  %v2023_v48 = vld [vmem:[#allocation2 + $0x158] sm:$0xff]  }
 0x48f   :  { %v605_v50 = vpack.c.bf16 %v603_v49, %v603_v49  ;;  %1829 = vmatprep.subr.bf16.mxu0 %v1995_v17  ;;  %v2024_v49 = vld [vmem:[#allocation2 + $0x198] sm:$0xff]  }
 0x491   :  { %1822 = vmatmul.mubr.msk.bf16.vlgmr.msra.gmra.mrb[20].mxu1 %vm557_vm1, %v605_v50  ;;  %v2025_v50 = vld [vmem:[#allocation2 + $0x160] sm:$0xff]  }
 0x492   :  { %1830 = vmatpush3.bf16.msra.mxu0 %v1995_v17  ;;  %1866 = vmatpush3.bf16.msra.mxu1 %v2009_v1  ;;  %v2022_v17 = vld [vmem:[#allocation2 + $0x190] sm:$0xff]  }
 0x493   :  { %1831 = vmatprep.subr.bf16.mxu0 %v1996_v51  ;;  %1867 = vmatprep.subr.bf16.mxu1 %v2010_v2 }
 0x496   :  { %1832 = vmatpush3.bf16.msra.mxu0 %v1996_v51  ;;  %1868 = vmatpush3.bf16.msra.mxu1 %v2010_v2  ;;  %v2026_v51 = vld [vmem:[#allocation2 + $0x1a0] sm:$0xff]  }
 0x497   :  { %1833 = vmatprep.subr.bf16.mxu0 %v1997_v52  ;;  %1869 = vmatprep.subr.bf16.mxu1 %v2011_v3 }
 0x49a   :  { %1834 = vmatpush3.bf16.msra.mxu0 %v1997_v52  ;;  %1870 = vmatpush3.bf16.msra.mxu1 %v2011_v3  ;;  %v2027_v52 = vld [vmem:[#allocation2 + $0x168] sm:$0xff]  }
 0x49b   :  { %1835 = vmatprep.subr.bf16.mxu0 %v1998_v53  ;;  %1871 = vmatprep.subr.bf16.mxu1 %v2012_v7 }
 0x49e   :  { %1836 = vmatpush3.bf16.msra.mxu0 %v1998_v53  ;;  %1872 = vmatpush3.bf16.msra.mxu1 %v2012_v7  ;;  %v2028_v53 = vld [vmem:[#allocation2 + $0x1a8] sm:$0xff]  }
 0x49f   :  { %1837 = vmatprep.subr.bf16.mxu0 %v1999_v56  ;;  %1873 = vmatprep.subr.bf16.mxu1 %v2013_v8 }
 0x4a2   :  { %1838 = vmatpush3.bf16.msra.mxu0 %v1999_v56  ;;  %1874 = vmatpush3.bf16.msra.mxu1 %v2013_v8  ;;  %v2031_v56 = vld [vmem:[#allocation2 + $0x178] sm:$0xff]  }
 0x4a3   :  { %1839 = vmatprep.subr.bf16.mxu0 %v2000_v59  ;;  %1875 = vmatprep.subr.bf16.mxu1 %v2014_v9 }
 0x4a6   :  { %1840 = vmatpush3.bf16.msra.mxu0 %v2000_v59  ;;  %1876 = vmatpush3.bf16.msra.mxu1 %v2014_v9 }
 0x4a7   :  { %1845 = vmatprep.subr.bf16.mxu0 %v2001_v62 }
 0x4db   :  { %v647_v54 = vpop.f32.mrb[12].mxu1 }
 0x4dc   :  { %v1805_v55 = vpop.f32.mrb[13].mxu1 }
 0x4dd   :  { %v650_v57 = vpop.f32.mrb[14].mxu1  ;;  %v2030_v55 = vld [vmem:[#allocation2 + $0x1b0] sm:$0xff]  }
 0x4de   :  { %v1806_v58 = vpop.f32.mrb[15].mxu1  ;;  %v2032_v57 = vld [vmem:[#allocation2 + $0x1b8] sm:$0xff]  }
 0x4df   :  { %v1607_v58 = vld [vmem:[%s2337_s2 + $0x3] ss:$0 sm:$0xff] }
 0x4e3   :  { %v693_v60 = vpop.f32.mrb[16].mxu1 }
 0x4e4   :  { %v1811_v61 = vpop.f32.mrb[17].mxu1 }
 0x4e5   :  { %v696_v63 = vpop.f32.mrb[18].mxu1 }
 0x4e6   :  { %v1812_v0 = vpop.f32.mrb[19].mxu1 }
 0x55c   :  { %v739_v10 = vpop.f32.mrb[4].mxu0 }
 0x55d   :  { %v791_v11 = vpack.c.bf16 %v739_v10, %v647_v54  ;;  %v1817_v12 = vpop.f32.mrb[5].mxu0  ;;  %v2029_v54 = vld [vmem:[#allocation2 + $0x170] sm:$0xff]  }
 0x55e   :  { %v742_v13 = vpop.f32.mrb[6].mxu0 }
 0x55f   :  { %v1818_v14 = vpop.f32.mrb[7].mxu0  ;;  %1841 = vmatprep.mubr.bf16.mxu0 %v791_v11 }
 0x564   :  { %v785_v15 = vpop.f32.mrb[20].mxu1 }
 0x565   :  { %v792_v16 = vpack.c.bf16 %v785_v15, %v693_v60  ;;  %v1823_v20 = vpop.f32.mrb[21].mxu1 }
 0x566   :  { %v788_v22 = vpop.f32.mrb[22].mxu1 }
 0x567   :  { %v1824_v23 = vpop.f32.mrb[23].mxu1  ;;  %1842 = vmatmul.mubr.bf16.vlgmr.msra.gmra.mrb[8].mxu0 %v792_v16 }
 0x568   :  { %1846 = vmatpush3.bf16.msra.mxu0 %v2001_v62  ;;  %1861 = vmatprep.mubr.bf16.mxu0 %v2177_v6  ;;  %v2015_v6 = vld [vmem:[#allocation2 + $0x130] sm:$0xff]  }
 0x569   :  { %1847 = vmatprep.subr.bf16.mxu0 %v2002_v21  ;;  %1877 = vmatprep.subr.bf16.mxu1 %v2015_v6 }
 0x56a   :  { %1878 = vmatpush3.bf16.msra.mxu1 %v2015_v6 }
 0x56b   :  { %1879 = vmatprep.subr.bf16.mxu1 %v2016_v30 }
 0x56c   :  { %1848 = vmatpush3.bf16.msra.mxu0 %v2002_v21 }
 0x56d   :  { %1849 = vmatprep.subr.bf16.mxu0 %v2003_v24 }
 0x56e   :  { %1880 = vmatpush3.bf16.msra.mxu1 %v2016_v30 }
 0x56f   :  { %1885 = vmatprep.subr.bf16.mxu1 %v2120_v37 }
 0x570   :  { %1850 = vmatpush3.bf16.msra.mxu0 %v2003_v24 }
 0x571   :  { %1851 = vmatprep.subr.bf16.mxu0 %v2004_v25 }
 0x574   :  { %1852 = vmatpush3.bf16.msra.mxu0 %v2004_v25 }
 0x575   :  { %1853 = vmatprep.subr.bf16.mxu0 %v2005_v26 }
 0x578   :  { %1854 = vmatpush3.bf16.msra.mxu0 %v2005_v26 }
 0x579   :  { %1855 = vmatprep.subr.bf16.mxu0 %v2006_v27 }
 0x57c   :  { %1856 = vmatpush3.bf16.msra.mxu0 %v2006_v27 }
 0x57d   :  { %1857 = vmatprep.subr.bf16.mxu0 %v2007_v28 }
 0x580   :  { %1858 = vmatpush3.bf16.msra.mxu0 %v2007_v28 }
 0x581   :  { %1859 = vmatprep.subr.bf16.mxu0 %v2008_v29 }
 0x584   :  { %1860 = vmatpush3.bf16.msra.mxu0 %v2008_v29 }
 0x585   :  { %1905 = vmatprep.subr.bf16.mxu0 %v2120_v37 }
 0x587   :  { %1862 = vmatmul.mubr.bf16.vlgmr.msra.gmra.mrb[8].mxu0 %v2192_v19  ;;  %v1606_v19 = vld [vmem:[%s2337_s2 + $0x2] ss:$0 sm:$0xff] }
 0x588   :  { %1921 = vmatprep.mubr.msk.bf16.mxu0 %vm2121_vm0, %v2120_v37  ;;  %1906 = vmatpush3.bf16.msra.mxu0 %v2017_v31 }
 0x589   :  { %1907 = vmatprep.subr.bf16.mxu0 %v2120_v37 }
 0x58c   :  { %1908 = vmatpush3.bf16.msra.mxu0 %v2019_v5 }
 0x58d   :  { %1909 = vmatprep.subr.bf16.mxu0 %v2120_v37 }
 0x590   :  { %1910 = vmatpush3.bf16.msra.mxu0 %v2021_v47  ;;  %v2035_v47 = vld [vmem:[#allocation2 + $0x1d0] sm:$0xff]  }
 0x591   :  { %1911 = vmatprep.subr.bf16.mxu0 %v2120_v37 }
 0x594   :  { %1912 = vmatpush3.bf16.msra.mxu0 %v2023_v48  ;;  %v2037_v48 = vld [vmem:[#allocation2 + $0x1e0] sm:$0xff]  }
 0x595   :  { %1913 = vmatprep.subr.bf16.mxu0 %v2120_v37 }
 0x598   :  { %1914 = vmatpush3.bf16.msra.mxu0 %v2025_v50  ;;  %v2039_v50 = vld [vmem:[#allocation2 + $0x1f0] sm:$0xff]  }
 0x599   :  { %1915 = vmatprep.subr.bf16.mxu0 %v2120_v37 }
 0x59c   :  { %1916 = vmatpush3.bf16.msra.mxu0 %v2027_v52  ;;  %v2041_v52 = vld [vmem:[%s2338_s3] sm:$0xff]  }
 0x59d   :  { %1917 = vmatprep.subr.bf16.mxu0 %v2120_v37 }
 0x5a0   :  { %1918 = vmatpush3.bf16.msra.mxu0 %v2029_v54  ;;  %v2043_v54 = vld [vmem:[%s2338_s3 + $0x10] sm:$0xff]  }
 0x5a1   :  { %1919 = vmatprep.subr.bf16.mxu0 %v2120_v37 }
 0x5a4   :  { %1920 = vmatpush3.bf16.msra.mxu0 %v2031_v56  ;;  %v2045_v56 = vld [vmem:[%s2338_s3 + $0x20] sm:$0xff]  }
 0x5a5   :  { %1945 = vmatprep.subr.bf16.mxu0 %v2120_v37 }
 0x65a   :  { %v1863_v32 = vpop.f32.mrb[8].mxu0 }
 0x65b   :  { %v993_v33 = vadd.f32 %v1863_v32, %v1606_v19  ;;  %v972_v34 = vpop.f32.mrb[9].mxu0 }
 0x65c   :  { %v991_v35 = vadd.f32 %v1606_v19, %v972_v34  ;;  %v1864_v36 = vpop.f32.mrb[10].mxu0 }
 0x65d   :  { %v994_v38 = vadd.f32 %v1864_v36, %v1606_v19  ;;  %v975_v39 = vpop.f32.mrb[11].mxu0  ;;  %v997_v41 = vmax.f32 %v993_v33, 0.0 }
 0x65e   :  { %v992_v40 = vadd.f32 %v1606_v19, %v975_v39  ;;  %v995_v4 = vmax.f32 %v991_v35, 0.0 }
 0x65f   :  { %v998_v42 = vmax.f32 %v994_v38, 0.0 }
 0x660   :  { %v996_v18 = vmax.f32 %v992_v40, 0.0 }
 0x661   :  { %v1000_v43 = vpack.c.bf16 %v998_v42, %v997_v41 }
 0x662   :  { %v999_v44 = vpack.c.bf16 %v996_v18, %v995_v4 }
 0x664   :  { %1881 = vmatprep.mubr.bf16.mxu1 %v999_v44  ;;  %v2033_v44 = vld [vmem:[#allocation2 + $0x1c0] sm:$0xff]  }
 0x665   :  { %1882 = vmatmul.mubr.bf16.vlgmr.msra.gmra.mrb[24].mxu1 %v1000_v43 }
 0x666   :  { %1886 = vmatpush3.bf16.msra.mxu1 %v2018_v45  ;;  %1901 = vmatprep.mubr.msk.bf16.mxu1 %vm2121_vm0, %v2120_v37 }
 0x667   :  { %1887 = vmatprep.subr.bf16.mxu1 %v2120_v37 }
 0x66a   :  { %1888 = vmatpush3.bf16.msra.mxu1 %v2020_v46  ;;  %v2034_v46 = vld [vmem:[#allocation2 + $0x1c8] sm:$0xff]  }
 0x66b   :  { %1889 = vmatprep.subr.bf16.mxu1 %v2120_v37 }
 0x66e   :  { %1890 = vmatpush3.bf16.msra.mxu1 %v2022_v17  ;;  %v2036_v17 = vld [vmem:[#allocation2 + $0x1d8] sm:$0xff]  }
 0x66f   :  { %1891 = vmatprep.subr.bf16.mxu1 %v2120_v37 }
 0x672   :  { %1892 = vmatpush3.bf16.msra.mxu1 %v2024_v49  ;;  %v2038_v49 = vld [vmem:[#allocation2 + $0x1e8] sm:$0xff]  }
 0x673   :  { %1893 = vmatprep.subr.bf16.mxu1 %v2120_v37 }
 0x676   :  { %1894 = vmatpush3.bf16.msra.mxu1 %v2026_v51  ;;  %v2040_v51 = vld [vmem:[#allocation2 + $0x1f8] sm:$0xff]  }
 0x677   :  { %1895 = vmatprep.subr.bf16.mxu1 %v2120_v37 }
 0x67a   :  { %1896 = vmatpush3.bf16.msra.mxu1 %v2028_v53  ;;  %v2042_v53 = vld [vmem:[%s2338_s3 + $0x8] sm:$0xff]  }
 0x67b   :  { %1897 = vmatprep.subr.bf16.mxu1 %v2120_v37 }
 0x67e   :  { %1898 = vmatpush3.bf16.msra.mxu1 %v2030_v55  ;;  %v2044_v55 = vld [vmem:[%s2338_s3 + $0x18] sm:$0xff]  }
 0x67f   :  { %1899 = vmatprep.subr.bf16.mxu1 %v2120_v37 }
 0x682   :  { %1900 = vmatpush3.bf16.msra.mxu1 %v2032_v57  ;;  %v2046_v57 = vld [vmem:[%s2338_s3 + $0x28] sm:$0xff]  }
 0x683   :  { %1925 = vmatprep.subr.bf16.mxu1 %v2120_v37 }
 0x738   :  { %v1883_v59 = vpop.f32.mrb[24].mxu1 }
 0x739   :  { %v1096_v60 = vadd.f32 %v1883_v59, %v1607_v58  ;;  %v1087_v61 = vpop.f32.mrb[25].mxu1 }
 0x73a   :  { %v1088_v62 = vadd.f32 %v1607_v58, %v1087_v61  ;;  %v1884_v63 = vpop.f32.mrb[26].mxu1 }
 0x73b   :  { %v1104_v0 = vmax.f32 %v1096_v60, 0.0  ;;  %v1099_v1 = vadd.f32 %v1884_v63, %v1607_v58  ;;  %v1090_v2 = vpop.f32.mrb[27].mxu1  ;;  %v1632_v60 = vld [vmem:[%s2337_s2 + $0x4] ss:$0 sm:$0xff] }
 0x73c   :  { %v1102_v3 = vmax.f32 %v1088_v62, 0.0  ;;  %v1091_v7 = vadd.f32 %v1607_v58, %v1090_v2 }
 0x73d   :  { %v1112_v8 = vrot.slane %v1104_v0, 4  ;;  %v1105_v9 = vmax.f32 %v1099_v1, 0.0 }
 0x73e   :  { %v1106_v10 = vrot.slane %v1102_v3, 4  ;;  %v1103_v11 = vmax.f32 %v1091_v7, 0.0 }
 0x73f   :  { %v1113_v12 = vadd.f32 %v1112_v8, %v1104_v0  ;;  %v1124_v13 = vrot.slane %v1105_v9, 4 }
 0x740   :  { %v1107_v14 = vadd.f32 %v1106_v10, %v1102_v3  ;;  %v1118_v15 = vrot.slane %v1103_v11, 4  ;;  %v2047_v10 = vld [vmem:[%s2338_s3 + $0x30] sm:$0xff]  }
 0x741   :  { %v1114_v16 = vrot.slane %v1113_v12, 2  ;;  %v1125_v20 = vadd.f32 %v1124_v13, %v1105_v9 }
 0x742   :  { %v1108_v21 = vrot.slane %v1107_v14, 2  ;;  %v1119_v22 = vadd.f32 %v1118_v15, %v1103_v11  ;;  %v2048_v11 = vld [vmem:[%s2338_s3 + $0x38] sm:$0xff]  }
 0x743   :  { %v1115_v23 = vadd.f32 %v1114_v16, %v1113_v12  ;;  %v1126_v24 = vrot.slane %v1125_v20, 2  ;;  %v1633_v12 = vld [vmem:[%s2337_s2 + $0x5] ss:$0 sm:$0xff]  ;;  %s2122_s2 = smov [#allocation5]  }
 0x744   :  { %v1109_v25 = vadd.f32 %v1108_v21, %v1107_v14  ;;  %v1120_v26 = vrot.slane %v1119_v22, 2  ;;  %s1557_s3 = sshll.u32 %s2122_s2, 4  ;;  %s1558_s3 = int_to_ptr.vmem [resolvable:$true] %s1557_s3 }
 0x745   :  { %v1116_v27 = vrot.slane %v1115_v23, 1  ;;  %v1127_v28 = vadd.f32 %v1126_v24, %v1125_v20  ;;  %p2096_p9 = scmp.lt.s32.totalorder %s1558_s3, %s1558_s3 }
 0x746   :  { %v1110_v29 = vrot.slane %v1109_v25, 1  ;;  %v1121_v6 = vadd.f32 %v1120_v26, %v1119_v22 }
 0x747   :  { %v1117_v30 = vadd.f32 %v1116_v27, %v1115_v23  ;;  %v1128_v31 = vrot.slane %v1127_v28, 1 }
 0x748   :  { %v1111_v5 = vadd.f32 %v1110_v29, %v1109_v25  ;;  %v1122_v19 = vrot.slane %v1121_v6, 1 }
 0x749   :  { %v1131_v32 = vpack.c.bf16 %v1117_v30, %v1117_v30  ;;  %v1129_v33 = vadd.f32 %v1128_v31, %v1127_v28 }
 0x74a   :  { %v1130_v34 = vpack.c.bf16 %v1111_v5, %v1111_v5  ;;  %v1123_v35 = vadd.f32 %v1122_v19, %v1121_v6 }
 0x74b   :  { %v1233_v36 = vunpack.c.l.b16 %v1131_v32  ;;  %v1133_v38 = vpack.c.bf16 %v1129_v33, %v1129_v33 }
 0x74c   :  { %v1232_v39 = vunpack.c.l.b16 %v1130_v34  ;;  %v1132_v40 = vpack.c.bf16 %v1123_v35, %v1123_v35 }
 0x74d   :  { %v1137_v41 = vunpack.c.l.b16 %v1133_v38 }
 0x74e   :  { %v1136_v42 = vunpack.c.l.b16 %v1132_v40  ;;  %v1234_v4 = vsel %vm1138_vm3, %v1233_v36, %v1232_v39 }
 0x74f   :  { %v1235_v18 = vpack.c.b16 %v1234_v4, %v1234_v4 }
 0x750   :  { %v1139_v43 = vsel %vm1138_vm3, %v1137_v41, %v1136_v42 }
 0x751   :  { %1922 = vmatmul.mubr.bf16.vlgmr.msra.gmra.mrb[12].mxu0 %v1235_v18  ;;  %v1140_v45 = vpack.c.b16 %v1139_v43, %v1139_v43 }
 0x752   :  { %1961 = vmatprep.mubr.msk.bf16.mxu0 %vm2121_vm0, %v2120_v37  ;;  %1946 = vmatpush3.bf16.msra.mxu0 %v2041_v52 }
 0x753   :  { %1902 = vmatmul.mubr.bf16.vlgmr.msra.gmra.mrb[28].mxu1 %v1140_v45  ;;  %1947 = vmatprep.subr.bf16.mxu0 %v2120_v37 }
 0x754   :  { %1926 = vmatpush3.bf16.msra.mxu1 %v2033_v44  ;;  %1941 = vmatprep.mubr.msk.bf16.mxu1 %vm2121_vm0, %v2120_v37 }
 0x755   :  { %1927 = vmatprep.subr.bf16.mxu1 %v2120_v37 }
 0x756   :  { %1948 = vmatpush3.bf16.msra.mxu0 %v2042_v53 }
 0x757   :  { %1949 = vmatprep.subr.bf16.mxu0 %v2120_v37 }
 0x758   :  { %1928 = vmatpush3.bf16.msra.mxu1 %v2034_v46 }
 0x759   :  { %1929 = vmatprep.subr.bf16.mxu1 %v2120_v37 }
 0x75a   :  { %1950 = vmatpush3.bf16.msra.mxu0 %v2043_v54 }
 0x75b   :  { %1951 = vmatprep.subr.bf16.mxu0 %v2120_v37 }
 0x75c   :  { %1930 = vmatpush3.bf16.msra.mxu1 %v2035_v47 }
 0x75d   :  { %1931 = vmatprep.subr.bf16.mxu1 %v2120_v37 }
 0x75e   :  { %1952 = vmatpush3.bf16.msra.mxu0 %v2044_v55 }
 0x75f   :  { %1953 = vmatprep.subr.bf16.mxu0 %v2120_v37 }
 0x760   :  { %1932 = vmatpush3.bf16.msra.mxu1 %v2036_v17 }
 0x761   :  { %1933 = vmatprep.subr.bf16.mxu1 %v2120_v37 }
 0x762   :  { %1954 = vmatpush3.bf16.msra.mxu0 %v2045_v56 }
 0x763   :  { %1955 = vmatprep.subr.bf16.mxu0 %v2120_v37 }
 0x764   :  { %1934 = vmatpush3.bf16.msra.mxu1 %v2037_v48 }
 0x765   :  { %1935 = vmatprep.subr.bf16.mxu1 %v2120_v37 }
 0x766   :  { %1956 = vmatpush3.bf16.msra.mxu0 %v2046_v57 }
 0x767   :  { %1957 = vmatprep.subr.bf16.mxu0 %v2120_v37 }
 0x768   :  { %1936 = vmatpush3.bf16.msra.mxu1 %v2038_v49 }
 0x769   :  { %1937 = vmatprep.subr.bf16.mxu1 %v2120_v37 }
 0x76a   :  { %1958 = vmatpush3.bf16.msra.mxu0 %v2047_v10 }
 0x76b   :  { %1959 = vmatprep.subr.bf16.mxu0 %v2120_v37 }
 0x76c   :  { %1938 = vmatpush3.bf16.msra.mxu1 %v2039_v50 }
 0x76d   :  { %1939 = vmatprep.subr.bf16.mxu1 %v2120_v37  ;;  %v1642_v37 = vld [vmem:[%s2339_s4] ss:$0 sm:$0xff]  ;;  %s2091_s4 = scalar_lea.vmem %s1558_s3, 32 }
 0x76e   :  { %1960 = vmatpush3.bf16.msra.mxu0 %v2048_v11  ;;  %p2092_p8 = scmp.ne.s32.totalorder %s1558_s3, %s2091_s4  ;;  %p2097_p10 = scmp.lt.s32.totalorder %s2091_s4, %s2091_s4 }
 0x770   :  { %1940 = vmatpush3.bf16.msra.mxu1 %v2040_v51  ;;  %p2098_p11 = por %p2097_p10, %p2096_p9 }
 0x772   :  { %p2099_p12 = pnand %p2098_p11, %p2092_p8 }
 0x824   :  { %v1319_v58 = vpop.f32.mrb[12].mxu0 }
 0x825   :  { %v1923_v59 = vpop.f32.mrb[13].mxu0 }
 0x826   :  { %v1224_v61 = vpop.f32.mrb[28].mxu1  ;;  %v1322_v62 = vpop.f32.mrb[14].mxu0 }
 0x827   :  { %v1320_v63 = vadd.f32 %v1319_v58, %v1224_v61  ;;  %v1903_v0 = vpop.f32.mrb[29].mxu1  ;;  %v1924_v1 = vpop.f32.mrb[15].mxu0 }
 0x828   :  { %v1227_v2 = vpop.f32.mrb[30].mxu1 }
 0x829   :  { %v1329_v3 = vadd.f32 %v1632_v60, %v1320_v63  ;;  %v1904_v7 = vpop.f32.mrb[31].mxu1 }
 0x82b   :  { %v1330_v8 = vmax.f32 %v1329_v3, 0.0 }
 0x82d   :  { %v1331_v9 = vpack.c.bf16 %v1330_v8, %v1330_v8 }
 0x82f   :  { %1942 = vmatmul.mubr.bf16.vlgmr.msra.gmra.mrb[32].mxu1 %v1331_v9 }
 0x902   :  { %v1418_v13 = vpop.f32.mrb[32].mxu1 }
 0x903   :  { %v1419_v14 = vadd.f32 %v1633_v12, %v1418_v13  ;;  %v1943_v15 = vpop.f32.mrb[33].mxu1 }
 0x904   :  { %v1421_v16 = vpop.f32.mrb[34].mxu1 }
 0x905   :  { %v1424_v20 = vmax.f32 %v1419_v14, 0.0  ;;  %v1944_v21 = vpop.f32.mrb[35].mxu1 }
 0x907   :  { %v1425_v22 = vpack.c.bf16 %v1424_v20, %v1424_v20 }
 0x909   :  { %1962 = vmatmul.mubr.bf16.vlgmr.msra.gmra.mrb[16].mxu0 %v1425_v22 }
 0x9dc   :  { %v1531_v23 = vpop.f32.mrb[16].mxu0 }
 0x9dd   :  { %v1532_v24 = vadd.f32 %v1642_v37, %v1531_v23  ;;  %v1963_v25 = vpop.f32.mrb[17].mxu0 }
 0x9de   :  { %v1534_v26 = vpop.f32.mrb[18].mxu0 }
 0x9df   :  { %v1964_v27 = vpop.f32.mrb[19].mxu0  ;;  %v1538_v28 = vsel %vm1537_vm4, %v1532_v24, -inf }
 0x9e0   :  { %1539 = vmax.xlane.f32.xlu1 %v1538_v28 }
 0xa6d   :  { %v1540_v29 = vpop.xlane.xlu1 %1539 }
 0xa6e   :  { %v1541_v6 = vsub.f32 %v1532_v24, %v1540_v29 }
 0xa70   :  { %v1542_v30 = vmul.f32 1.442695, %v1541_v6 }
 0xa72   :  { %2065 = vpow2.f32 %v1542_v30 }
 0xa7c   :  { %v2066_v31 = vpop.eup %2065 }
 0xa7d   :  { %v1544_v5 = vsel %vm1537_vm4, %v2066_v31, 0.0 }
 0xa7e   :  { %1545 = vadd.xlane.f32.xlu1 %v1544_v5 }
 0xb0b   :  { %v1546_v19 = vpop.xlane.xlu1 %1545 }
 0xb0c   :  { %2067 = vlog2.f32 %v1546_v19 }
 0xb16   :  { %v2068_v32 = vpop.eup %2067 }
 0xb17   :  { %v1548_v33 = vmul.f32 0.6931472, %v2068_v32 }
 0xb19   :  { %v1549_v34 = vsub.f32 %v1541_v6, %v1548_v33 }
 0xb1b   :  { %1550 = vst.msk [vmem:[#allocation5] sm:$0x3] %vm1537_vm4, %v1549_v34 }
 0xb1c   :  { %2102 = shalt.err (!%p2099_p12)
}
 0xb1d   :  { %s2103_s18 = scalar_lea.hbm %s2340_s5, 32 }
 0xb1e   :  { %p2104_p13 = scmp.ne.s32.totalorder %s2340_s5, %s2103_s18  ;;  %p2107_p0 = scmp.lt.u32.totalorder %s2103_s18, %s2340_s5 }
 0xb20   :  { %p2109_p1 = pnand %p2107_p0, %p2104_p13 }
 0xb22   :  { %2112 = shalt.err (!%p2109_p1)
}
 0xb23   :  { %1560 = dma.vmem_to_hbm [thread:$0]  %s1558_s3, 32, %s2340_s5, [#allocation4]  }
 0xb24   :  { %2115 = dma.done.wait [#allocation4], 32  }
 0xb25   :  { %2116 = vsyncadd [#allocation4], 4294967264 }
 0xb26   :  { %1564 = vsyncpa [#allocation3], 1 }
 0xb27   :  { %1565 = vsyncpa [#allocation4], 1 }

</bundles_post_ra>
